<compile_context>
chip_gen: v7x
topology: tpu7x:2x2x1
jax: 0.10.0
libtpu: 0.0.40
codegen_flags: <defaults>
</compile_context>

<pallas_src>
import functools

import jax
import jax.numpy as jnp
from jax.experimental import pallas as pl
from jax.experimental.pallas import tpu as pltpu

_IN_FEATURES = 9
_LANE = 128
# 131072 lanes -> ~24 MiB pipeline footprint (x: 2*64*tb, out: 2*32*tb bytes),
# which fits the 32 MiB scoped-VMEM limit requested below on every generation.
_MAX_BLOCK_BATCH = 131072
_SCOPED_VMEM_BYTES = 32 * 1024 * 1024


def _round_up(n, m):
    return ((n + m - 1) // m) * m


def _lr_fused_kernel(b_ref, w_ref, xt_ref, out_ref):
    """Fused (Linear(9,16) @ Linear(16,1)) forward on one lane-dense batch tile.

    b_ref  : (1, 1)  f32 in SMEM  -- fused scalar bias (b1 @ w2 + b2)
    w_ref  : (9, 1)  f32 in VMEM  -- fused weight column (w1 @ w2), grid-resident
    xt_ref : (9, TB) f32 in VMEM  -- x^T tile, batch on the lane axis
    out_ref: (1, TB) f32 in VMEM  -- y^T tile (lane-dense stores)
    """
    prod = xt_ref[...] * w_ref[...]                        # (9, TB), VPU multiply
    # Sublane reduce split into a clean 8-row power-of-two tree (rows 0..7 live in
    # one vreg row) plus the single extra row 8 -- cheaper than a ragged 9-row
    # reduce and keeps the XLU work per 128 outputs minimal (matters on v7x).
    y = jnp.sum(prod[0:8, :], axis=0, keepdims=True) + prod[8:9, :]   # (1, TB)
    out_ref[...] = y + b_ref[0, 0]


def _lr_gemv_lane_dense(xt, w_fused, b_fused, *, block_batch):
    """xt: [9, B] f32 (feature-major) -> [1, B] f32."""
    k, batch = xt.shape
    assert k == _IN_FEATURES, f"expected {_IN_FEATURES} input features, got {k}"

    block_batch = min(int(block_batch), _MAX_BLOCK_BATCH)
    # Clamp the lane tile so small/mid batches don't pad up to a full tile.
    tb = min(block_batch, _round_up(batch, _LANE))
    tb = max(_LANE, (tb // _LANE) * _LANE)
    grid = (pl.cdiv(batch, tb),)   # ragged tail handled by masked boundary block

    return pl.pallas_call(
        _lr_fused_kernel,
        out_shape=jax.ShapeDtypeStruct((1, batch), jnp.float32),
        grid=grid,
        in_specs=[
            # fused scalar bias -> SMEM, read once per tile as a scalar
            pl.BlockSpec(memory_space=pltpu.MemorySpace.SMEM),
            # fused weight column: constant index_map -> stays resident in VMEM
            pl.BlockSpec((_IN_FEATURES, 1), lambda i: (0, 0)),
            # streamed x^T tiles: (9, TB), batch on lanes -> dense loads, pipelined
            pl.BlockSpec((_IN_FEATURES, tb), lambda i: (0, i)),
        ],
        out_specs=pl.BlockSpec((1, tb), lambda i: (0, i)),
        compiler_params=pltpu.CompilerParams(
            # batch tiles are independent -> shard across TensorCores on v7x
            dimension_semantics=("parallel",),
            # allow big tiles on v5e (16 MiB default scoped limit) without
            # overshooting v7x's 64 MiB physical VMEM
            vmem_limit_bytes=_SCOPED_VMEM_BYTES,
        ),
    )(b_fused, w_fused, xt)


def _fold_params(w1, b1, w2, b2):
    """Fold the two affine layers (exact: no activation between them)."""
    w_fused = (w1 @ w2).astype(jnp.float32)                       # (9, 1)
    b_fused = (b1 @ w2 + b2).reshape(1, 1).astype(jnp.float32)    # (1, 1)
    return w_fused, b_fused


def lr_forward_feature_major(xt, w1, b1, w2, b2, *, block_batch=65536):
    """Zero-copy fast path: xt is already feature-major [9, B] -> returns [1, B]."""
    w_fused, b_fused = _fold_params(w1, b1, w2, b2)
    return _lr_gemv_lane_dense(xt, w_fused, b_fused, block_batch=block_batch)


def lr_forward_pallas(x, w1, b1, w2, b2, *, block_batch=65536):
    """x: [B, 9] f32 -> [B, 1] f32, matching nn.Linear(9,16) -> nn.Linear(16,1)."""
    batch = x.shape[0]
    w_fused, b_fused = _fold_params(w1, b1, w2, b2)
    # TODO(synk): if the producer of x can emit feature-major [9, B], call
    # lr_forward_feature_major directly and skip this single relayout copy --
    # it is the only remaining HBM traffic above the 40*B-byte roofline.
    xt = x.T                                                       # (9, B), no pad
    out_t = _lr_gemv_lane_dense(xt, w_fused, b_fused, block_batch=block_batch)
    return out_t.reshape(batch, 1)   # (1, B) -> (B, 1): contiguous, free


def lr_forward(x, w1, b1, w2, b2, *, min_pallas_batch=1024, block_batch=65536):
    """Dispatcher: tiny batches are faster as a plain XLA expression (kernel launch
    + DMA setup overhead dominates a few hundred FLOPs)."""
    if x.shape[0] < min_pallas_batch:
        return (x @ w1 + b1) @ w2 + b2
    return lr_forward_pallas(x, w1, b1, w2, b2, block_batch=block_batch)


def init_params(key):
    """Deterministic init mimicking PyTorch nn.Linear default (U[-1/sqrt(fan_in), +1/sqrt(fan_in)]).

    Weights are stored as [in, out] so the forward is x @ W + b
    (PyTorch stores [out, in] and computes x @ W.T + b).
    """
    k1, k2, k3, k4 = jax.random.split(key, 4)
    bound1 = 1.0 / jnp.sqrt(9.0)
    bound2 = 1.0 / jnp.sqrt(16.0)
    w1 = jax.random.uniform(k1, (9, 16), jnp.float32, -bound1, bound1)
    b1 = jax.random.uniform(k2, (1, 16), jnp.float32, -bound1, bound1)
    w2 = jax.random.uniform(k3, (16, 1), jnp.float32, -bound2, bound2)
    b2 = jax.random.uniform(k4, (1, 1), jnp.float32, -bound2, bound2)
    return w1, b1, w2, b2


if __name__ == "__main__":
    key = jax.random.PRNGKey(0)
    kx, kp = jax.random.split(key)

    # Small demo: batch deliberately NOT a multiple of 128 and larger than the
    # tile, so the ragged-tail boundary block and the multi-step grid both run.
    batch = 1000
    block_batch = 256
    x = jax.random.normal(kx, (batch, 9), jnp.float32)
    w1, b1, w2, b2 = init_params(kp)

    fwd = jax.jit(functools.partial(lr_forward_pallas, block_batch=block_batch))
    out = fwd(x, w1, b1, w2, b2)
    jax.block_until_ready(out)

    # Reference: the original (unfolded) two-layer forward.  Folding changes the
    # FP association slightly (~1e-6 relative), well inside the tolerance.
    ref = (x @ w1 + b1) @ w2 + b2
    assert out.shape == (batch, 1)
    assert jnp.allclose(out, ref, atol=1e-4, rtol=1e-4), "mismatch vs reference"
    print("KERNEL_OK")
</pallas_src>

<mosaic_0001>
module attributes {stable_mosaic.version = 11 : i64} {
  func.func @_lr_fused_kernel(%arg0: i32, %arg1: memref<1x1xf32, #tpu.memory_space<smem>>, %arg2: memref<9x1xf32, #tpu.memory_space<vmem>>, %arg3: memref<9x256xf32, #tpu.memory_space<vmem>>, %arg4: memref<1x256xf32, #tpu.memory_space<vmem>>) attributes {dimension_semantics = [#tpu.dimension_semantics<parallel>], iteration_bounds = array<i64: 4>, scalar_prefetch = 0 : i64, scratch_operands = 0 : i64, tpu.core_type = #tpu.core_type<tc>, window_params = [{transform_indices = @transform_0, window_bounds = array<i64: 1, 1>}, {pipeline_mode = #tpu.pipeline_mode<synchronous>, transform_indices = @transform_1, window_bounds = array<i64: 9, 1>}, {transform_indices = @transform_2, window_bounds = array<i64: 9, 256>}, {transform_indices = @transform_3, window_bounds = array<i64: 1, 256>}]} {
    %c0 = arith.constant 0 : index
    %c0_0 = arith.constant 0 : index
    %0 = vector.load %arg3[%c0, %c0_0] : memref<9x256xf32, #tpu.memory_space<vmem>>, vector<9x256xf32>
    %c0_1 = arith.constant 0 : index
    %c0_2 = arith.constant 0 : index
    %1 = vector.load %arg2[%c0_1, %c0_2] : memref<9x1xf32, #tpu.memory_space<vmem>>, vector<9x1xf32>
    %2 = vector.broadcast %1 : vector<9x1xf32> to vector<9x256xf32>
    %3 = arith.mulf %0, %2 : vector<9x256xf32>
    %4 = vector.extract_strided_slice %3 {offsets = [0, 0], sizes = [8, 256], strides = [1, 1]} : vector<9x256xf32> to vector<8x256xf32>
    %cst = arith.constant dense<0.000000e+00> : vector<256xf32>
    %5 = vector.multi_reduction <add>, %4, %cst [0] : vector<8x256xf32> to vector<256xf32>
    %6 = vector.shape_cast %5 : vector<256xf32> to vector<1x256xf32>
    %7 = vector.extract_strided_slice %3 {offsets = [8, 0], sizes = [1, 256], strides = [1, 1]} : vector<9x256xf32> to vector<1x256xf32>
    %8 = arith.addf %6, %7 : vector<1x256xf32>
    %c0_3 = arith.constant 0 : index
    %c0_4 = arith.constant 0 : index
    %9 = memref.load %arg1[%c0_3, %c0_4] : memref<1x1xf32, #tpu.memory_space<smem>>
    %10 = vector.broadcast %9 : f32 to vector<1x256xf32>
    %11 = arith.addf %8, %10 : vector<1x256xf32>
    %c0_5 = arith.constant 0 : index
    %c0_6 = arith.constant 0 : index
    %12 = vector.load %arg4[%c0_5, %c0_6] : memref<1x256xf32, #tpu.memory_space<vmem>>, vector<1x256xf32>
    tpu.vector_store %arg4[%c0_5, %c0_6], %11 {strides = array<i32>} : memref<1x256xf32, #tpu.memory_space<vmem>>, vector<1x256xf32>,
    return
  }
  func.func @transform_0(%arg0: i32) -> (i32, i32) {
    %c0_i32 = arith.constant 0 : i32
    %c0_i32_0 = arith.constant 0 : i32
    %c0_i32_1 = arith.constant 0 : i32
    return %c0_i32, %c0_i32_0 : i32, i32
  }
  func.func @transform_1(%arg0: i32) -> (i32, i32) {
    %c0_i32 = arith.constant 0 : i32
    %c0_i32_0 = arith.constant 0 : i32
    %c0_i32_1 = arith.constant 0 : i32
    return %c0_i32, %c0_i32_0 : i32, i32
  }
  func.func @transform_2(%arg0: i32) -> (i32, i32) {
    %c0_i32 = arith.constant 0 : i32
    %c0_i32_0 = arith.constant 0 : i32
    return %c0_i32, %arg0 : i32, i32
  }
  func.func @transform_3(%arg0: i32) -> (i32, i32) {
    %c0_i32 = arith.constant 0 : i32
    %c0_i32_0 = arith.constant 0 : i32
    return %c0_i32, %arg0 : i32, i32
  }
}

</mosaic_0001>

<bundles_post_ra>
// kernel: lr_forward_pallas.1
= control target key start
LH: loop header
LB: loop body
LE: loop exit
PB: predicated region body
PF: predicated region fallthrough
CT: control target
= control target key end

     0   :  { %s701_s0 = inlined_call_operand.<no memory space> [shape: f32[1,1], index: 0, kind: input, shape index: {}]   ;;  %s702_s1 = inlined_call_operand.vmem [shape: f32[9,1], index: 1, kind: input, shape index: {}]   ;;  %s703_s2 = inlined_call_operand.hbm [shape: f32[9,1000], index: 2, kind: input, shape index: {}]   ;;  %s704_s3 = inlined_call_operand.hbm [shape: f32[1,1000], index: 3, kind: output, shape index: {}]  }
   0x1   :  { %8 = sst [smem:[#allocation2]] %s701_s0 }
   0x2   :  { %9 = vsyncpa [#allocation4], 0 }
   0x3   :  { %11 = vsyncpa [#allocation4 + $0x1], 0 }
   0x4   :  { %12 = vsyncpa [#allocation5], 0 }
   0x5   :  { %14 = vsyncpa [#allocation5 + $0x1], 0  ;;  %s534_s14 = smov 0   ;;  %s536_s15 = smov 0  }
   0x6   :  { %s538_s16 = smov 0   ;;  %s540_s17 = smov 0  }
   0x7 LB: > { %s555_s0 = sadd.s32 4294967295, %s502_s17   ;;  %s338_s18 = sadd.s32 4294967294, %s502_s17   ;;  %s502_s17 = sphi %s540_s17, %s717_s17   ;;  %s498_s16 = sphi %s538_s16, %s716_s16   ;;  %s494_s15 = sphi %s536_s15, %s715_s15   ;;  %s490_s14 = sphi %s534_s14, %s714_s14  }
   0x8   : > { %s559_s19 = sadd.s32 1, %s502_s17   ;;  %s69_s20 = sadd.s32 1, %s498_s16 }
   0x9   : > { %s66_s21 = ssub.s32 %s502_s17, %s559_s19  ;;  %p76_p0 = scmp.ne.s32.totalorder %s498_s16, %s494_s15 }
   0xa   : > { %p67_p1 = scmp.eq.s32.totalorder %s66_s21, 0  ;;  %p77_p2 = scmp.eq.s32.totalorder %s502_s17, 0 }
   0xb   : > { %p82_p3 = scmp.ne.s32.totalorder %s494_s15, %s490_s14  ;;  %p83_p4 = scmp.eq.s32.totalorder %s555_s0, 0 }
   0xc   : > { %s571_s22 = scalar_select %p67_p1, %s498_s16, %s69_s20  }
   0xd   : > { %p573_p5 = por %p77_p2, %p76_p0  ;;  %p577_p6 = por %p83_p4, %p82_p3 }
   0xe   : > { %p106_p7 = scmp.eq.s32.totalorder %s555_s0, 3  ;;  %p112_p8 = scmp.eq.s32.totalorder %s338_s18, 3 }
   0xf   : > { %p366_p9 = scmp.lt.s32.totalorder %s502_s17, 4  ;;  %s138_s27 = sand.u32 1, %s498_s16  }
  0x10   : > { %p583_p10 = por %p106_p7, %p76_p0  ;;  %p587_p11 = por %p112_p8, %p82_p3 }
  0x11   : > { %s352_s28 = sshll.u32 %s502_s17, 8  ;;  %s341_s29 = sshll.u32 %s138_s27, 5 }
  0x12   : > { %s708_s25 = scalar_select %p583_p10, 1, 0 }
  0x13   : > { %s709_s26 = scalar_select %p587_p11, 1, 0 }
  0x14   : > { %s596_s5 = scalar_lea.hbm %s703_s2, %s352_s28  ;;  %s142_s6 = scalar_lea.vmem [#allocation3], %s341_s29 }
  0x15   : > { %s149_s7 = sshll.u32 %s142_s6, 4  ;;  %p600_p12 = pnand %p366_p9, %p573_p5  ;;  %s604_s7 = int_to_ptr.vmem [resolvable:$true] %s149_s7 }
  0x16   : > { %s607_s9 = scalar_lea.sflag [#allocation4], %s138_s27  ;;  %s406_s10 = scalar_lea.hbm %s596_s5, 512 }
  0x17   : > { %p407_p0 = scmp.ne.s32.totalorder %s596_s5, %s406_s10  ;;  %p408_p1 = pneg %p600_p12 }
  0x18   : > { %s411_s13 = scalar_lea.hbm %s703_s2, 2048  ;;  %p412_p4 = scmp.lt.u32.totalorder %s596_s5, %s703_s2 }
  0x19   : > { %p409_p2 = pnand %p408_p1, %p407_p0  ;;  %p413_p5 = scmp.lt.u32.totalorder %s411_s13, %s406_s10 }
  0x1a   : > { %p415_p8 = scmp.lt.u32.totalorder %s406_s10, %s596_s5 }
  0x1b   : > { %p410_p3 = pneg %p409_p2  ;;  %p414_p7 = por %p413_p5, %p412_p4 }
  0x1d   : > { %p416_p9 = por %p415_p8, %p414_p7 }
  0x1f   : > { %p417_p13 = pnand %p416_p9, %p410_p3 }
  0x21   : > { %420 = shalt.err (!%p417_p13)
}
  0x22   : > { %s421_s21 = scalar_lea.vmem %s604_s7, 512  ;;  %s504_s23 = smov [#allocation3]  }
  0x23   : > { %p422_p0 = scmp.ne.s32.totalorder %s604_s7, %s421_s21  ;;  %s426_s27 = sshll.u32 %s504_s23, 4  ;;  %s427_s27 = int_to_ptr.vmem [resolvable:$false] %s426_s27 }
  0x24   : > { %s428_s28 = scalar_lea.vmem %s427_s27, 1024  ;;  %p429_p10 = scmp.lt.s32.totalorder %s604_s7, %s427_s27 }
  0x25   : > { %p424_p2 = pnand %p422_p0, %p408_p1  ;;  %p430_p4 = scmp.lt.s32.totalorder %s428_s28, %s421_s21 }
  0x27   : > { %p425_p11 = pneg %p424_p2  ;;  %p431_p5 = por %p430_p4, %p429_p10 }
  0x29   : > { %p432_p7 = pnand %p431_p5, %p425_p11 }
  0x2b   : > { %435 = shalt.err (!%p432_p7)
}
  0x2c   : > { %s505_s29 = smov 1024   ;;  %s506_s30 = smov 256  }
  0x2d   : > { %s507_s4 = smov 16   ;;  %p157_p13 = scmp.lt.s32.totalorder %s502_s17, 5 }
  0x2e   : > { %361 = dma.hbm_to_vmem [thread:$0]  (!%p600_p12), %s596_s5, 512, %s604_s7, %s607_s9, %s505_s29, %s506_s30, %s507_s4  }
  0x2f   : > { %p711_p1 = scmp.ge.s32.totalorder %s502_s17, 1 }
  0x31   : > { %p158_p3 = pnand %p711_p1, %p157_p13 }
  0x32   : > { %s639_s6 = sand.u32 (!%p158_p3), 1, %s494_s15  }
  0x33   : > { %161 = sbr.rel (%p158_p3) target bundleno = 227 (0xe3), region = 32  ;;  %s345_s10 = sshll.u32 (!%p158_p3), %s639_s6, 5 }
  0x34   : > { %s164_s11 = scalar_lea.sflag (!%p158_p3), [#allocation4], %s639_s6  ;;  %s167_s12 = scalar_lea.vmem (!%p158_p3), [#allocation3], %s345_s10 }
  0x3a   : > { %481 = dma.done.wait (%p577_p6), %s164_s11, 512  }
  0x3b   : > { %483 = vsyncadd (%p577_p6), %s164_s11, 4294966784  ;;  %v508_v0 = vmov 0   ;;  %v196_v1 = vld [vmem:[%s702_s1] sm:$0xff]  ;;  %v197_v2 = vld [vmem:[%s702_s1 + $0x8] sm:$0x1]  ;;  %s226_s24 = sld [smem:[#allocation2]]  ;;  %v236_v16 = vlaneseq }
  0x3c   : > { %405 = vset.pattern.permute.xlu0 %v508_v0  ;;  %v192_v3 = vld [vmem:[%s167_s12] sm:$0xff]  ;;  %v193_v4 = vld [vmem:[%s167_s12 + $0x8] sm:$0xff]  ;;  %v509_v14 = vmov 1966171168   ;;  %v194_v20 = vld [vmem:[%s167_s12 + $0x10] sm:$0x1] }
  0x3d   : > { %200 = vperm.xlu0 %405, %v196_v1   ;;  %v234_v15 = vunpack.c.l.s4 %v509_v14  ;;  %v195_v21 = vld [vmem:[%s167_s12 + $0x18] sm:$0x1]  ;;  %v237_v25 = vshrl.u32 %v236_v16, 7  ;;  %s346_s13 = sshll.u32 %s639_s6, 1  ;;  %s353_s18 = sshll.u32 %s555_s0, 5  ;;  %vm250_vm0 = vcmp.lt.s32.totalorder %v236_v16, 256 }
  0x3e   : > { %s189_s20 = scalar_lea.vmem [#allocation6], %s346_s13  ;;  %s658_s28 = scalar_lea.hbm %s704_s3, %s353_s18 }
  0x3f   : > { %v235_v24 = vunpack.c.0.s8 %v234_v15  ;;  %s268_s21 = sshll.u32 %s189_s20, 4  ;;  %s254_s29 = scalar_lea.sflag [#allocation5], %s639_s6  ;;  %s660_s21 = int_to_ptr.vmem [resolvable:$true] %s268_s21 }
  0x40   : > { %s436_s30 = scalar_lea.vmem %s660_s21, 32  ;;  %p712_p10 = scmp.ne.s32.totalorder %s708_s25, 0 }
  0x41   : > { %205 = vperm.xlu0 %405, %v197_v2   ;;  %v227_v30 = vstv %s226_s24  ;;  %v238_v33 = vsub.s32 %v235_v24, %v237_v25  ;;  %p437_p6 = scmp.ne.s32.totalorder %s660_s21, %s436_s30  ;;  %s510_s0 = smov [#allocation6]  }
  0x42   : > { %s440_s4 = sshll.u32 %s510_s0, 4  ;;  %s441_s4 = int_to_ptr.vmem [resolvable:$false] %s440_s4 }
  0x43   : > { %p438_p11 = pnand %p437_p6, %p712_p10  ;;  %s442_s10 = scalar_lea.vmem %s441_s4, 64 }
  0x44   : > { %p443_p8 = scmp.lt.s32.totalorder %s660_s21, %s441_s4  ;;  %p444_p9 = scmp.lt.s32.totalorder %s442_s10, %s436_s30 }
  0x45   : > { %p439_p12 = pneg %p438_p11 }
  0x46   : > { %p445_p0 = por %p444_p9, %p443_p8 }
  0x48   : > { %p446_p2 = pnand %p445_p0, %p439_p12 }
  0xbc   : > { %v201_v5 = vpop.permute.xlu0 %200 }
  0xbd   : > { %v208_v6 = vmul.f32 %v201_v5, %v192_v3  ;;  %v209_v7 = vmul.f32 %v201_v5, %v193_v4 }
  0xbf   : > { %v212_v8 = vrot.slane %v208_v6, 4  ;;  %v218_v9 = vrot.slane %v209_v7, 4 }
  0xc0   : > { %v206_v19 = vpop.permute.xlu0 %205 }
  0xc1   : > { %v213_v10 = vadd.f32 %v212_v8, %v208_v6  ;;  %v219_v11 = vadd.f32 %v218_v9, %v209_v7  ;;  %v210_v26 = vmul.f32 %v206_v19, %v194_v20  ;;  %v211_v27 = vmul.f32 %v206_v19, %v195_v21 }
  0xc3   : > { %v214_v12 = vrot.slane %v213_v10, 2  ;;  %v220_v13 = vrot.slane %v219_v11, 2 }
  0xc5   : > { %v215_v17 = vadd.f32 %v214_v12, %v213_v10  ;;  %v221_v18 = vadd.f32 %v220_v13, %v219_v11 }
  0xc7   : > { %v216_v22 = vrot.slane %v215_v17, 1  ;;  %v222_v23 = vrot.slane %v221_v18, 1 }
  0xc9   : > { %v217_v28 = vadd.f32 %v216_v22, %v215_v17  ;;  %v223_v29 = vadd.f32 %v222_v23, %v221_v18 }
  0xcb   : > { %v224_v31 = vadd.f32 %v217_v28, %v210_v26  ;;  %v225_v32 = vadd.f32 %v223_v29, %v211_v27 }
  0xcd   : > { %v228_v34 = vadd.f32 %v227_v30, %v224_v31  ;;  %v229_v35 = vadd.f32 %v227_v30, %v225_v32 }
  0xcf   : > { %v232_v36 = vcombine.low %v228_v34, %v229_v35 }
  0xd1   : > { %v239_v37 = vrot.slane %v232_v36, %v238_v33 }
  0xd3   : > { %v246_v38 = vrot.slane %v239_v37, %v238_v33 }
  0xd5   : > { %252 = vst.msk [vmem:[%s189_s20] sm:$0x3] %vm250_vm0, %v246_v38 }
  0xd6   : > { %449 = shalt.err (!%p446_p2)
}
  0xd7   : > { %s450_s6 = scalar_lea.hbm %s658_s28, 32  ;;  %s454_s5 = scalar_lea.hbm %s704_s3, 128 }
  0xd8   : > { %p451_p4 = scmp.ne.s32.totalorder %s658_s28, %s450_s6  ;;  %p455_p13 = scmp.lt.u32.totalorder %s658_s28, %s704_s3 }
  0xd9   : > { %p456_p1 = scmp.lt.u32.totalorder %s454_s5, %s450_s6  ;;  %p458_p6 = scmp.lt.u32.totalorder %s450_s6, %s658_s28 }
  0xda   : > { %p452_p5 = pnand %p451_p4, %p712_p10 }
  0xdb   : > { %p457_p3 = por %p456_p1, %p455_p13 }
  0xdc   : > { %p453_p7 = pneg %p452_p5 }
  0xdd   : > { %p459_p11 = por %p458_p6, %p457_p3 }
  0xdf   : > { %p460_p12 = pnand %p459_p11, %p453_p7 }
  0xe1   : > { %463 = shalt.err (!%p460_p12)
}
  0xe2   : > { %356 = dma.vmem_to_hbm [thread:$0]  (%p712_p10), %s660_s21, 32, %s658_s28, %s254_s29  }
  0xe3 PF: > { %p367_p8 = scmp.ge.s32.totalorder %s502_s17, 2  ;;  %s280_s9 = sand.u32 1, %s490_s14  }
  0xe4   : > { %p713_p9 = scmp.ne.s32.totalorder %s709_s26, 0  ;;  %s281_s24 = scalar_lea.sflag [#allocation5], %s280_s9 }
  0xe6   : > { %p363_p0 = pnand %p367_p8, %p713_p9 }
  0xe8   : > { %485 = dma.done.wait (!%p363_p0), %s281_s24, 32  }
  0xe9   : > { %487 = vsyncadd (!%p363_p0), %s281_s24, 4294967264  ;;  %p17_p2 = scmp.ge.s32.totalorder %s559_s19, 6   ;;  %s714_s14 = smov %s494_s15 }
  0xea   : > { %s715_s15 = smov %s498_s16  ;;  %s716_s16 = smov %s571_s22 }
  0xeb   : > { %s717_s17 = smov %s559_s19  ;;  %19 = sbr.rel (!%p17_p2) target bundleno = 7 (0x7), region = 77 }
  0xf2   :  { %286 = vsyncpa [#allocation4], 1 }
  0xf3   :  { %288 = vsyncpa [#allocation4 + $0x1], 1 }
  0xf4   :  { %289 = vsyncpa [#allocation5], 1 }
  0xf5   :  { %291 = vsyncpa [#allocation5 + $0x1], 1 }

</bundles_post_ra>
